<compile_context>
chip_gen: v7x
topology: tpu7x:2x2x1
jax: 0.10.0
libtpu: 0.0.40
codegen_flags: <defaults>
</compile_context>

<pallas_src>
import jax
import jax.numpy as jnp
from jax.experimental import pallas as pl
from jax.experimental.pallas import tpu as pltpu


# ------------------------------------------------------------------- kernel --

def encoder_kernel(emb_ref, penc_ref, w_ref, b_ref, scale_ref, o_ref):
    """Fused Encoder combine for one row tile.

    emb_ref  : VMEM (T, F)  bf16  gathered mat2vec rows
    penc_ref : VMEM (T, D)  f32   [pe | ple] concatenated on the lane axis
    w_ref    : VMEM (F, D)  bf16  fc_mat2vec weight (pre-transposed, * 2**emb_scaler)
    b_ref    : VMEM (1, D)  f32   fc_mat2vec bias * 2**emb_scaler
    scale_ref: VMEM (1, D)  f32   [pe_scaler]*D/2 ++ [ple_scaler]*D/2
    o_ref    : VMEM (T, D)  f32
    """
    # bf16 MXU matmul, f32 accumulate.
    x = jnp.dot(emb_ref[...], w_ref[...], preferred_element_type=jnp.float32)
    # Single full-width (lane-dense) store: x + b + penc * per-half scale.
    o_ref[...] = x + b_ref[...] + penc_ref[...] * scale_ref[...]


# ------------------------------------------------------------------ wrapper --

def pallas_encoder(emb, penc, w_t, b_eff, scale_row, *, tile_n=512):
    """emb: (N, F) bf16, penc: (N, D) f32, w_t: (F, D) bf16 -> (N, D) f32."""
    N, F = emb.shape
    D = w_t.shape[1]
    assert penc.shape == (N, D)
    assert b_eff.shape == (1, D) and scale_row.shape == (1, D)

    # Row tile: multiple of 16 (bf16 sublane tiling of the emb stream), capped
    # so the double-buffered per-step footprint fits v7x's 64 MiB VMEM.
    tile_n = max(16, min(int(tile_n), 1024))
    tile_n = (tile_n // 16) * 16
    n_pad = ((N + tile_n - 1) // tile_n) * tile_n
    if n_pad != N:
        emb = jnp.pad(emb, ((0, n_pad - N), (0, 0)))
        penc = jnp.pad(penc, ((0, n_pad - N), (0, 0)))
    grid = (n_pad // tile_n,)

    # Explicit scoped-VMEM budget: 2x double-buffered row streams + resident
    # weight/bias/scale + slack.  >= 32 MiB (above v5e's 16 MiB default),
    # <= 64 MiB (v7x physical).
    bytes_per_step = (2 * tile_n * (F * emb.dtype.itemsize
                                    + D * penc.dtype.itemsize
                                    + D * 4)
                      + F * D * w_t.dtype.itemsize + 2 * D * 4)
    vmem_limit = int(min(64 << 20, max(32 << 20, 2 * bytes_per_step + (4 << 20))))

    # TODO(synk): fuse the cbfv / pe-table row gathers into the kernel
    # (PrefetchScalarGridSpec scalar-prefetch indices + in-kernel gather from a
    # VMEM-resident table) to remove the N*(F+D) HBM round trip entirely.
    # TODO(synk): if DMA is still exposed on v7x, add pipeline_mode=pl.Buffered(3)
    # to the emb/penc in_specs.
    out = pl.pallas_call(
        encoder_kernel,
        out_shape=jax.ShapeDtypeStruct((n_pad, D), jnp.float32),
        grid_spec=pltpu.PrefetchScalarGridSpec(
            num_scalar_prefetch=0,
            grid=grid,
            in_specs=[
                pl.BlockSpec((tile_n, F), lambda i: (i, 0)),   # emb rows (bf16)
                pl.BlockSpec((tile_n, D), lambda i: (i, 0)),   # [pe | ple] slab
                pl.BlockSpec((F, D), lambda i: (0, 0)),        # weight, VMEM-resident
                pl.BlockSpec((1, D), lambda i: (0, 0)),        # bias (scaled)
                pl.BlockSpec((1, D), lambda i: (0, 0)),        # per-half scale row
            ],
            out_specs=pl.BlockSpec((tile_n, D), lambda i: (i, 0)),
        ),
        compiler_params=pltpu.CompilerParams(
            dimension_semantics=("parallel",),   # megacore-shard row tiles (v7x)
            vmem_limit_bytes=vmem_limit),
        cost_estimate=pl.CostEstimate(
            flops=2 * n_pad * F * D + 3 * n_pad * D,
            transcendentals=0,
            bytes_accessed=(n_pad * F * emb.dtype.itemsize
                            + n_pad * D * penc.dtype.itemsize
                            + n_pad * D * 4
                            + F * D * w_t.dtype.itemsize + 2 * D * 4)),
    )(emb, penc, w_t, b_eff, scale_row)
    return out[:N]


# ------------------------------------------------------------ plain-JAX glue --

def build_pe_table(d_half, resolution):
    x = jnp.linspace(0.0, resolution - 1, resolution,
                     dtype=jnp.float32).reshape(resolution, 1)
    fr = jnp.linspace(0.0, d_half - 1, d_half,
                      dtype=jnp.float32).reshape(1, d_half)
    fr = jnp.tile(fr, (resolution, 1))
    pe = jnp.zeros((resolution, d_half), dtype=jnp.float32)
    pe = pe.at[:, 0::2].set(jnp.sin(x / jnp.power(50.0, 2.0 * fr[:, 0::2] / d_half)))
    pe = pe.at[:, 1::2].set(jnp.cos(x / jnp.power(50.0, 2.0 * fr[:, 1::2] / d_half)))
    return pe


def fractional_encode(frac, pe_table, resolution, log10):
    x = frac
    if log10:
        x = 0.0025 * jnp.log2(x) ** 2
        x = jnp.minimum(x, 1.0)
    x = jnp.maximum(x, 1.0 / resolution)
    idx = (jnp.round(x * resolution) - 1.0).astype(jnp.int32)
    return jnp.take(pe_table, idx, axis=0)                   # (B, S, D/2)


def init_params(key, d_model, feat_size, vocab):
    k0, k1, k2 = jax.random.split(key, 3)
    # synthetic mat2vec table (row 0 = zeros, like the original)
    cbfv = jnp.concatenate(
        [jnp.zeros((1, feat_size), jnp.float32),
         0.1 * jax.random.normal(k0, (vocab, feat_size), jnp.float32)], axis=0)
    w = 0.1 * jax.random.normal(k1, (d_model, feat_size), jnp.float32)   # torch [out,in]
    b = 0.01 * jax.random.normal(k2, (1, d_model), jnp.float32)
    return dict(
        cbfv=cbfv,
        w_m2v_t=w.T,                 # pre-transposed to [in, out] for the kernel
        b_m2v=b,
        emb_scaler=jnp.float32(1.0),
        pos_scaler=jnp.float32(1.0),
        pos_scaler_log=jnp.float32(1.0),
    )


def encoder_forward(params, src, frac, pe_table, *, resolution=5000, tile_n=512):
    B, S = src.shape
    F = params['cbfv'].shape[-1]
    D = params['w_m2v_t'].shape[1]
    d_half = D // 2

    emb_mult = 2.0 ** params['emb_scaler']
    pe_scaler = 2.0 ** (1.0 - params['pos_scaler']) ** 2      # 2 ** ((1-s)**2)
    ple_scaler = 2.0 ** (1.0 - params['pos_scaler_log']) ** 2

    # Gather mat2vec rows at bf16 so the big HBM matmul-operand stream is half-width.
    emb = jnp.take(params['cbfv'].astype(jnp.bfloat16), src, axis=0)      # (B,S,F) bf16

    # Lane-dense positional-encoding slab: [pe | ple] on the lane axis, f32.
    pe_g = fractional_encode(frac, pe_table, resolution, log10=False)
    ple_g = fractional_encode(frac, pe_table, resolution, log10=True)
    penc = jnp.concatenate([pe_g, ple_g], axis=-1)                        # (B,S,D) f32

    # Fold 2**emb_scaler into the projection weight/bias (exact for powers of two):
    #   (emb @ W + b) * m  ==  emb @ (W*m) + b*m
    w_eff = (params['w_m2v_t'] * emb_mult).astype(jnp.bfloat16)           # (F,D) bf16
    b_eff = (params['b_m2v'] * emb_mult).astype(jnp.float32)              # (1,D) f32

    scale_row = jnp.concatenate(
        [jnp.broadcast_to(pe_scaler, (1, d_half)),
         jnp.broadcast_to(ple_scaler, (1, d_half))], axis=1).astype(jnp.float32)

    out = pallas_encoder(emb.reshape(B * S, F), penc.reshape(B * S, D),
                         w_eff, b_eff, scale_row, tile_n=tile_n)
    return out.reshape(B, S, D)


def encoder_reference(params, src, frac, pe_table, *, resolution=5000):
    """Pure-JAX f32 reference mirroring the PyTorch Encoder.forward."""
    emb = jnp.take(params['cbfv'], src, axis=0)
    x = (emb @ params['w_m2v_t'] + params['b_m2v']) * (2.0 ** params['emb_scaler'])
    D = x.shape[-1]
    pe_g = fractional_encode(frac, pe_table, resolution, log10=False)
    ple_g = fractional_encode(frac, pe_table, resolution, log10=True)
    pe_scaler = 2.0 ** (1.0 - params['pos_scaler']) ** 2
    ple_scaler = 2.0 ** (1.0 - params['pos_scaler_log']) ** 2
    x = x.at[..., :D // 2].add(pe_g * pe_scaler)
    x = x.at[..., D // 2:].add(ple_g * ple_scaler)
    return x


# --------------------------------------------------------------------- main --

if __name__ == "__main__":
    D_MODEL, FEAT_SIZE, VOCAB = 32, 32, 20
    B, S = 2, 16
    RESOLUTION = 5000

    key = jax.random.PRNGKey(0)
    kp, ks, kf = jax.random.split(key, 3)

    params = init_params(kp, D_MODEL, FEAT_SIZE, VOCAB)
    src = jax.random.randint(ks, (B, S), 0, VOCAB + 1)                 # int indices
    frac = jax.random.uniform(kf, (B, S), jnp.float32, 0.01, 1.0)      # fractions
    pe_table = build_pe_table(D_MODEL // 2, RESOLUTION)

    # tile_n=16 -> 2-step "parallel" row grid even at toy sizes (exercises the
    # tiled/megacore path); production sizes use the default tile_n=512.
    out = encoder_forward(params, src, frac, pe_table,
                          resolution=RESOLUTION, tile_n=16)
    out = jax.block_until_ready(out)

    ref = jax.block_until_ready(
        encoder_reference(params, src, frac, pe_table, resolution=RESOLUTION))

    assert out.shape == (B, S, D_MODEL), out.shape
    assert bool(jnp.all(jnp.isfinite(out)))
    # bf16 matmul operands with f32 accumulate -> slightly looser tolerance.
    assert bool(jnp.allclose(out, ref, rtol=5e-3, atol=5e-3)), \
        float(jnp.max(jnp.abs(out - ref)))
    print("KERNEL_OK")
</pallas_src>

<mosaic_0001>
module attributes {stable_mosaic.version = 11 : i64} {
  func.func @encoder_kernel(%arg0: i32, %arg1: memref<16x32xbf16, #tpu.memory_space<vmem>>, %arg2: memref<16x32xf32, #tpu.memory_space<vmem>>, %arg3: memref<32x32xbf16, #tpu.memory_space<vmem>>, %arg4: memref<1x32xf32, #tpu.memory_space<vmem>>, %arg5: memref<1x32xf32, #tpu.memory_space<vmem>>, %arg6: memref<16x32xf32, #tpu.memory_space<vmem>>) attributes {dimension_semantics = [#tpu.dimension_semantics<parallel>], iteration_bounds = array<i64: 2>, scalar_prefetch = 0 : i64, scratch_operands = 0 : i64, tpu.core_type = #tpu.core_type<tc>, window_params = [{transform_indices = @transform_0, window_bounds = array<i64: 16, 32>}, {transform_indices = @transform_1, window_bounds = array<i64: 16, 32>}, {pipeline_mode = #tpu.pipeline_mode<synchronous>, transform_indices = @transform_2, window_bounds = array<i64: 32, 32>}, {pipeline_mode = #tpu.pipeline_mode<synchronous>, transform_indices = @transform_3, window_bounds = array<i64: 1, 32>}, {pipeline_mode = #tpu.pipeline_mode<synchronous>, transform_indices = @transform_4, window_bounds = array<i64: 1, 32>}, {transform_indices = @transform_5, window_bounds = array<i64: 16, 32>}]} {
    %c0 = arith.constant 0 : index
    %c0_0 = arith.constant 0 : index
    %0 = vector.load %arg1[%c0, %c0_0] : memref<16x32xbf16, #tpu.memory_space<vmem>>, vector<16x32xbf16>
    %c0_1 = arith.constant 0 : index
    %c0_2 = arith.constant 0 : index
    %1 = vector.load %arg3[%c0_1, %c0_2] : memref<32x32xbf16, #tpu.memory_space<vmem>>, vector<32x32xbf16>
    %cst = arith.constant dense<0.000000e+00> : vector<16x32xf32>
    %2 = tpu.matmul %0, %1, %cst {dimension_numbers = #tpu.dot_dimension_numbers<[1], [0], [0], [1], [0, 0, 1, 1], [], []>} : vector<16x32xbf16>, vector<32x32xbf16>, vector<16x32xf32> -> vector<16x32xf32>
    %c0_3 = arith.constant 0 : index
    %c0_4 = arith.constant 0 : index
    %3 = vector.load %arg4[%c0_3, %c0_4] : memref<1x32xf32, #tpu.memory_space<vmem>>, vector<1x32xf32>
    %4 = vector.broadcast %3 : vector<1x32xf32> to vector<16x32xf32>
    %5 = arith.addf %2, %4 : vector<16x32xf32>
    %c0_5 = arith.constant 0 : index
    %c0_6 = arith.constant 0 : index
    %6 = vector.load %arg2[%c0_5, %c0_6] : memref<16x32xf32, #tpu.memory_space<vmem>>, vector<16x32xf32>
    %c0_7 = arith.constant 0 : index
    %c0_8 = arith.constant 0 : index
    %7 = vector.load %arg5[%c0_7, %c0_8] : memref<1x32xf32, #tpu.memory_space<vmem>>, vector<1x32xf32>
    %8 = vector.broadcast %7 : vector<1x32xf32> to vector<16x32xf32>
    %9 = arith.mulf %6, %8 : vector<16x32xf32>
    %10 = arith.addf %5, %9 : vector<16x32xf32>
    %c0_9 = arith.constant 0 : index
    %c0_10 = arith.constant 0 : index
    %11 = vector.load %arg6[%c0_9, %c0_10] : memref<16x32xf32, #tpu.memory_space<vmem>>, vector<16x32xf32>
    tpu.vector_store %arg6[%c0_9, %c0_10], %10 {strides = array<i32>} : memref<16x32xf32, #tpu.memory_space<vmem>>, vector<16x32xf32>,
    return
  }
  func.func @transform_0(%arg0: i32) -> (i32, i32) {
    %c0_i32 = arith.constant 0 : i32
    %c0_i32_0 = arith.constant 0 : i32
    return %arg0, %c0_i32 : i32, i32
  }
  func.func @transform_1(%arg0: i32) -> (i32, i32) {
    %c0_i32 = arith.constant 0 : i32
    %c0_i32_0 = arith.constant 0 : i32
    return %arg0, %c0_i32 : i32, i32
  }
  func.func @transform_2(%arg0: i32) -> (i32, i32) {
    %c0_i32 = arith.constant 0 : i32
    %c0_i32_0 = arith.constant 0 : i32
    %c0_i32_1 = arith.constant 0 : i32
    return %c0_i32, %c0_i32_0 : i32, i32
  }
  func.func @transform_3(%arg0: i32) -> (i32, i32) {
    %c0_i32 = arith.constant 0 : i32
    %c0_i32_0 = arith.constant 0 : i32
    %c0_i32_1 = arith.constant 0 : i32
    return %c0_i32, %c0_i32_0 : i32, i32
  }
  func.func @transform_4(%arg0: i32) -> (i32, i32) {
    %c0_i32 = arith.constant 0 : i32
    %c0_i32_0 = arith.constant 0 : i32
    %c0_i32_1 = arith.constant 0 : i32
    return %c0_i32, %c0_i32_0 : i32, i32
  }
  func.func @transform_5(%arg0: i32) -> (i32, i32) {
    %c0_i32 = arith.constant 0 : i32
    %c0_i32_0 = arith.constant 0 : i32
    return %arg0, %c0_i32 : i32, i32
  }
}

</mosaic_0001>

<bundles_post_ra>
// kernel: tpu_custom_call.1
= control target key start
LH: loop header
LB: loop body
LE: loop exit
PB: predicated region body
PF: predicated region fallthrough
CT: control target
= control target key end

     0   :  { %s1092_s0 = inlined_call_operand.hbm [shape: bf16[32,32], index: 0, kind: input, shape index: {}]   ;;  %s1093_s1 = inlined_call_operand.hbm [shape: f32[32,32], index: 1, kind: input, shape index: {}]   ;;  %s1094_s2 = inlined_call_operand.hbm [shape: bf16[32,32], index: 2, kind: input, shape index: {}]   ;;  %s1095_s3 = inlined_call_operand.vmem [shape: f32[1,32], index: 3, kind: input, shape index: {}]   ;;  %s1096_s4 = inlined_call_operand.vmem [shape: f32[1,32], index: 4, kind: input, shape index: {}]   ;;  %s1097_s5 = inlined_call_operand.hbm [shape: f32[32,32], index: 5, kind: output, shape index: {}]  }
   0x1   :  { %1101 = sst [smem:[#allocation14_spill]] %s1092_s0 }
   0x2   :  { %1102 = sst [smem:[#allocation15_spill]] %s1094_s2 }
   0x3   :  { %10 = vsyncpa [#allocation3], 0 }
   0x4   :  { %12 = vsyncpa [#allocation3 + $0x1], 0 }
   0x5   :  { %13 = vsyncpa [#allocation6], 0 }
   0x6   :  { %15 = vsyncpa [#allocation6 + $0x1], 0 }
   0x7   :  { %16 = vsyncpa [#allocation4], 0 }
   0x8   :  { %18 = vsyncpa [#allocation4 + $0x1], 0  ;;  %s829_s18 = smov 0   ;;  %s831_s19 = smov 0  }
   0x9   :  { %s833_s20 = smov 0   ;;  %s835_s21 = smov 0  }
   0xa LB: > { %s850_s22 = sadd.s32 4294967295, %s785_s21   ;;  %s510_s23 = sadd.s32 4294967294, %s785_s21   ;;  %s785_s21 = sphi %s835_s21, %s1124_s21   ;;  %s781_s20 = sphi %s833_s20, %s1123_s20   ;;  %s777_s19 = sphi %s831_s19, %s1122_s19   ;;  %s773_s18 = sphi %s829_s18, %s1121_s18  }
   0xb   : > { %p44_p0 = scmp.ne.s32.totalorder %s777_s19, %s773_s18  ;;  %p1098_p1 = scmp.eq.s32.totalorder %s850_s22, 0 }
   0xc   : > { %p163_p3 = scmp.eq.s32.totalorder %s510_s23, 1  ;;  %p511_p5 = scmp.ge.s32.totalorder %s785_s21, 1 }
   0xd   : > { %p859_p4 = por %p1098_p1, %p44_p0  ;;  %p170_p7 = scmp.lt.s32.totalorder %s785_s21, 3 }
   0xe   : > { %p864_p6 = por %p163_p3, %p44_p0  ;;  %s787_s27 = smov [#allocation7]  }
   0xf   : > { %s1103_s24 = scalar_select %p859_p4, 1, 0 }
  0x10   : > { %s1104_s25 = scalar_select %p864_p6, 1, 0 }
  0x11   : > { %p869_p8 = pnand %p511_p5, %p170_p7  ;;  %s182_s28 = sshll.u32 %s787_s27, 4  ;;  %s873_s28 = int_to_ptr.vmem [resolvable:$true] %s182_s28 }
  0x12   : > { %s885_s30 = sadd.s32 1, %s785_s21   ;;  %s31_s6 = sadd.s32 1, %s781_s20 }
  0x13   : > { %s1105_s26 = scalar_select %p869_p8, 1, 0 }
  0x14   : > { %p560_p9 = pneg %p869_p8  ;;  %s28_s7 = ssub.s32 %s785_s21, %s885_s30 }
  0x15   : > { %s1107_s2 = sld [smem:[#allocation15_spill]] }
  0x16   : > { %p880_p11 = pnand %p560_p9, %p1098_p1 }
  0x18   : > { %p625_p13 = pneg %p880_p11 }
  0x1b   : > { %s623_s10 = scalar_lea.hbm %s1107_s2, 256 }
  0x1c   : > { %p624_p12 = scmp.ne.s32.totalorder %s1107_s2, %s623_s10  ;;  %p630_p5 = scmp.lt.u32.totalorder %s623_s10, %s1107_s2 }
  0x1e   : > { %p626_p0 = pnand %p625_p13, %p624_p12 }
  0x20   : > { %p627_p3 = pneg %p626_p0 }
  0x22   : > { %p632_p7 = pnand %p630_p5, %p627_p3 }
  0x24   : > { %635 = shalt.err (!%p632_p7)
}
  0x25   : > { %s636_s15 = scalar_lea.vmem %s873_s28, 256  ;;  %p644_p2 = scmp.lt.s32.totalorder %s873_s28, %s873_s28 }
  0x26   : > { %p637_p9 = scmp.ne.s32.totalorder %s873_s28, %s636_s15  ;;  %p645_p6 = scmp.lt.s32.totalorder %s636_s15, %s636_s15 }
  0x28   : > { %p639_p10 = pnand %p637_p9, %p625_p13  ;;  %p646_p4 = por %p645_p6, %p644_p2 }
  0x2a   : > { %p640_p1 = pneg %p639_p10 }
  0x2c   : > { %p647_p8 = pnand %p646_p4, %p640_p1 }
  0x2e   : > { %650 = shalt.err (!%p647_p8)
}
  0x2f   : > { %s788_s16 = smov 64   ;;  %s789_s17 = smov 4  }
  0x30   : > { %563 = dma.hbm_to_vmem [thread:$0]  (!%p880_p11), %s1107_s2, 256, %s873_s28, [#allocation6], %s788_s16, %s788_s16, %s789_s17  }
  0x31   : > { %p29_p1 = scmp.eq.s32.totalorder %s28_s7, 0  ;;  %p38_p2 = scmp.ne.s32.totalorder %s781_s20, %s777_s19 }
  0x32   : > { %p39_p4 = scmp.eq.s32.totalorder %s785_s21, 0  ;;  %p576_p6 = scmp.lt.s32.totalorder %s785_s21, 2 }
  0x33   : > { %s919_s8 = scalar_select %p29_p1, %s781_s20, %s31_s6  }
  0x34   : > { %p40_p8 = por %p39_p4, %p38_p2  ;;  %p1109_p10 = scmp.eq.s32.totalorder %s850_s22, 1 }
  0x35   : > { %1108 = sst [smem:[#allocation13_spill]] %s919_s8  ;;  %s928_s29 = sand.u32 1, %s781_s20  }
  0x36   : > { %p923_p12 = por %p1109_p10, %p38_p2  ;;  %s536_s10 = sshll.u32 %s785_s21, 7 }
  0x37   : > { %s514_s11 = sshll.u32 %s928_s29, 3  ;;  %s1111_s0 = sld [smem:[#allocation14_spill]] }
  0x38   : > { %s206_s6 = scalar_lea.vmem [#allocation2], %s514_s11  ;;  %p937_p11 = pnand %p576_p6, %p40_p8 }
  0x39   : > { %s213_s13 = sshll.u32 %s206_s6, 4  ;;  %s203_s23 = scalar_lea.sflag [#allocation3], %s928_s29  ;;  %s941_s13 = int_to_ptr.vmem [resolvable:$true] %s213_s13 }
  0x3a   : > { %p653_p0 = pneg %p937_p11 }
  0x3d   : > { %s935_s7 = scalar_lea.hbm %s1111_s0, %s536_s10  ;;  %s656_s28 = scalar_lea.hbm %s1111_s0, 256 }
  0x3e   : > { %s651_s27 = scalar_lea.hbm %s935_s7, 128  ;;  %p657_p7 = scmp.lt.u32.totalorder %s935_s7, %s1111_s0 }
  0x3f   : > { %p652_p13 = scmp.ne.s32.totalorder %s935_s7, %s651_s27  ;;  %p658_p9 = scmp.lt.u32.totalorder %s656_s28, %s651_s27 }
  0x40   : > { %p660_p2 = scmp.lt.u32.totalorder %s651_s27, %s935_s7 }
  0x41   : > { %p654_p3 = pnand %p653_p0, %p652_p13  ;;  %p659_p1 = por %p658_p9, %p657_p7 }
  0x43   : > { %p655_p5 = pneg %p654_p3  ;;  %p661_p4 = por %p660_p2, %p659_p1 }
  0x45   : > { %p662_p6 = pnand %p661_p4, %p655_p5 }
  0x47   : > { %665 = shalt.err (!%p662_p6)
}
  0x48   : > { %s666_s15 = scalar_lea.vmem %s941_s13, 128  ;;  %s790_s10 = smov [#allocation2]  }
  0x49   : > { %p667_p8 = scmp.ne.s32.totalorder %s941_s13, %s666_s15  ;;  %s671_s11 = sshll.u32 %s790_s10, 4  ;;  %s672_s11 = int_to_ptr.vmem [resolvable:$false] %s671_s11 }
  0x4a   : > { %s673_s12 = scalar_lea.vmem %s672_s11, 256  ;;  %p674_p3 = scmp.lt.s32.totalorder %s941_s13, %s672_s11 }
  0x4b   : > { %p669_p10 = pnand %p667_p8, %p653_p0  ;;  %p675_p7 = scmp.lt.s32.totalorder %s673_s12, %s666_s15 }
  0x4d   : > { %p670_p13 = pneg %p669_p10  ;;  %p676_p9 = por %p675_p7, %p674_p3 }
  0x4f   : > { %p677_p1 = pnand %p676_p9, %p670_p13 }
  0x51   : > { %680 = shalt.err (!%p677_p1)
}
  0x52   : > { %567 = dma.hbm_to_vmem [thread:$0]  (!%p937_p11), %s935_s7, 128, %s941_s13, %s203_s23, %s788_s16, %s788_s16, %s789_s17  }
  0x53   : > { %s517_s27 = sshll.u32 %s928_s29, 4  ;;  %s537_s28 = sshll.u32 %s785_s21, 8 }
  0x54   : > { %s980_s10 = scalar_lea.hbm %s1093_s1, %s537_s28  ;;  %s227_s11 = scalar_lea.vmem [#allocation5], %s517_s27 }
  0x55   : > { %s234_s12 = sshll.u32 %s227_s11, 4  ;;  %s1113_s0 = sand.u32 1, %s785_s21   ;;  %s982_s12 = int_to_ptr.vmem [resolvable:$true] %s234_s12 }
  0x56   : > { %s986_s2 = scalar_lea.sflag [#allocation6], %s1113_s0  ;;  %s681_s8 = scalar_lea.hbm %s980_s10, 256 }
  0x57   : > { %p682_p5 = scmp.ne.s32.totalorder %s980_s10, %s681_s8  ;;  %s686_s29 = scalar_lea.hbm %s1093_s1, 512 }
  0x58   : > { %p687_p6 = scmp.lt.u32.totalorder %s980_s10, %s1093_s1  ;;  %p688_p8 = scmp.lt.u32.totalorder %s686_s29, %s681_s8 }
  0x59   : > { %p684_p2 = pnand %p682_p5, %p653_p0  ;;  %p690_p13 = scmp.lt.u32.totalorder %s681_s8, %s980_s10 }
  0x5a   : > { %p689_p10 = por %p688_p8, %p687_p6 }
  0x5b   : > { %p685_p4 = pneg %p684_p2 }
  0x5c   : > { %p691_p3 = por %p690_p13, %p689_p10 }
  0x5e   : > { %p692_p7 = pnand %p691_p3, %p685_p4 }
  0x60   : > { %695 = shalt.err (!%p692_p7)
}
  0x61   : > { %s696_s0 = scalar_lea.vmem %s982_s12, 256  ;;  %s791_s23 = smov [#allocation5]  }
  0x62   : > { %p697_p9 = scmp.ne.s32.totalorder %s982_s12, %s696_s0  ;;  %s701_s27 = sshll.u32 %s791_s23, 4  ;;  %s702_s27 = int_to_ptr.vmem [resolvable:$false] %s701_s27 }
  0x63   : > { %s703_s28 = scalar_lea.vmem %s702_s27, 512  ;;  %p704_p2 = scmp.lt.s32.totalorder %s982_s12, %s702_s27 }
  0x64   : > { %p699_p1 = pnand %p697_p9, %p653_p0  ;;  %p705_p6 = scmp.lt.s32.totalorder %s703_s28, %s696_s0 }
  0x66   : > { %p700_p5 = pneg %p699_p1  ;;  %p706_p8 = por %p705_p6, %p704_p2 }
  0x68   : > { %p707_p10 = pnand %p706_p8, %p700_p5 }
  0x6a   : > { %710 = shalt.err (!%p707_p10)
}
  0x6b   : > { %s792_s8 = smov 128   ;;  %s793_s15 = smov 8  }
  0x6c   : > { %570 = dma.hbm_to_vmem [thread:$0]  (!%p937_p11), %s980_s10, 256, %s982_s12, %s986_s2, %s792_s8, %s792_s8, %s793_s15  }
  0x6d   : > { %p1114_p0 = scmp.ne.s32.totalorder %s1105_s26, 0 }
  0x6e   : > { %s1015_s6 = sand.u32 (!%p1114_p0), 1, %s777_s19   ;;  %p1115_p4 = scmp.ne.s32.totalorder (!%p1114_p0), %s1103_s24, 0 }
  0x6f   : > { %246 = sbr.rel (%p1114_p0) target bundleno = 367 (0x16f), region = 40  ;;  %s521_s11 = sshll.u32 (!%p1114_p0), %s1015_s6, 3 }
  0x70   : > { %s249_s16 = scalar_lea.sflag (!%p1114_p0), [#allocation3], %s1015_s6  ;;  %s252_s17 = scalar_lea.vmem (!%p1114_p0), [#allocation2], %s521_s11 }
  0x76   : > { %756 = dma.done.wait (%p1115_p4), %s249_s16, 128  }
  0x77   : > { %758 = vsyncadd (%p1115_p4), %s249_s16, 4294967168  ;;  %s257_s2 = sand.u32 1, %s850_s22   ;;  %s522_s26 = sshll.u32 %s1015_s6, 4 }
  0x78   : > { %s258_s14 = scalar_lea.sflag [#allocation6], %s257_s2  ;;  %s261_s10 = scalar_lea.vmem [#allocation5], %s522_s26 }
  0x79   : > { %760 = dma.done.wait (%p1115_p4), %s258_s14, 256  }
  0x7a   : > { %762 = vsyncadd (%p1115_p4), %s258_s14, 4294967040  ;;  %p1116_p11 = scmp.eq.s32.totalorder %s850_s22, 0 }
  0x7c   : > { %764 = dma.done.wait (%p1116_p11), [#allocation6], 256   ;;  %p1117_p13 = pmov %p1116_p11 }
  0x7d   : > { %v794_v0 = vmov 0.0   ;;  %vm795_vm0 = vmmov 0   ;;  %v620_v1 = vld [vmem:[#allocation7] sm:$0xff]   ;;  %v621_v2 = vld [vmem:[#allocation7 + $0x8] sm:$0xff]   ;;  %v622_v3 = vld [vmem:[%s252_s17] sm:$0xff]   ;;  %vm331_vm1 = vcmask 261120  }
  0x7e   : > { %766 = vsyncadd (%p1117_p13), [#allocation6], 4294967040  ;;  %542 = vmatprep.subr.bf16.mxu0 %v794_v0  ;;  %546 = vmatprep.mubr.msk.bf16.mxu0 %vm795_vm0, %v794_v0  ;;  %v376_v4 = vld [vmem:[%s261_s10] sm:$0xff]  ;;  %v377_v7 = vld [vmem:[%s261_s10 + $0x8] sm:$0xff]  ;;  %s538_s13 = sshll.u32 %s850_s22, 8  ;;  %s296_s0 = scalar_lea.vmem [#allocation8], %s522_s26 }
  0x7f   : > { %543 = vmatpush3.bf16.msra.mxu0 %v620_v1  ;;  %v530_v5 = vld [vmem:[%s1096_s4] ss:$0 sm:$0xff]  ;;  %s405_s23 = sshll.u32 %s296_s0, 4  ;;  %s1044_s8 = scalar_lea.hbm %s1097_s5, %s538_s13  ;;  %s1046_s23 = int_to_ptr.vmem [resolvable:$true] %s405_s23 }
  0x80   : > { %544 = vmatprep.subr.bf16.mxu0 %v794_v0  ;;  %v525_v6 = vld [vmem:[%s1095_s3] ss:$0 sm:$0xff]  ;;  %v385_v8 = vmul.f32 %v530_v5, %v376_v4  ;;  %v386_v12 = vmul.f32 %v530_v5, %v377_v7  ;;  %s392_s22 = scalar_lea.sflag [#allocation4], %s1015_s6  ;;  %s711_s15 = scalar_lea.vmem %s1046_s23, 256 }
  0x81   : > { %p712_p3 = scmp.ne.s32.totalorder %s1046_s23, %s711_s15  ;;  %s796_s11 = smov [#allocation8]  }
  0x82   : > { %s715_s16 = sshll.u32 %s796_s11, 4  ;;  %s716_s16 = int_to_ptr.vmem [resolvable:$false] %s715_s16 }
  0x83   : > { %545 = vmatpush3.bf16.msra.mxu0 %v621_v2  ;;  %p713_p7 = pnand %p712_p3, %p923_p12  ;;  %s717_s17 = scalar_lea.vmem %s716_s16, 512 }
  0x84   : > { %p718_p1 = scmp.lt.s32.totalorder %s1046_s23, %s716_s16  ;;  %p719_p5 = scmp.lt.s32.totalorder %s717_s17, %s711_s15 }
  0x85   : > { %p714_p9 = pneg %p713_p7 }
  0x86   : > { %547 = vmatmul.mubr.msk.bf16.vlgmr.msra.gmra.mrb[0].mxu0 %vm331_vm1, %v622_v3  ;;  %p720_p2 = por %p719_p5, %p718_p1 }
  0x88   : > { %p721_p6 = pnand %p720_p2, %p714_p9 }
 0x159   : > { %v369_v9 = vpop.f32.mrb[0].mxu0 }
 0x15a   : > { %v370_v10 = vadd.f32 %v525_v6, %v369_v9  ;;  %v548_v11 = vpop.f32.mrb[1].mxu0 }
 0x15b   : > { %v372_v13 = vpop.f32.mrb[2].mxu0 }
 0x15c   : > { %v387_v14 = vadd.f32 %v385_v8, %v370_v10  ;;  %v373_v15 = vadd.f32 %v525_v6, %v372_v13  ;;  %v549_v16 = vpop.f32.mrb[3].mxu0 }
 0x15e   : > { %389 = vst.msk [vmem:[%s296_s0] sm:$0xff] %vm331_vm1, %v387_v14  ;;  %v388_v17 = vadd.f32 %v386_v12, %v373_v15 }
 0x160   : > { %390 = vst.msk [vmem:[%s296_s0 + $0x8] sm:$0xff] %vm331_vm1, %v388_v17 }
 0x161   : > { %724 = shalt.err (!%p721_p6)
}
 0x162   : > { %s725_s2 = scalar_lea.hbm %s1044_s8, 256  ;;  %s729_s10 = scalar_lea.hbm %s1097_s5, 512 }
 0x163   : > { %p726_p8 = scmp.ne.s32.totalorder %s1044_s8, %s725_s2  ;;  %p730_p4 = scmp.lt.u32.totalorder %s1044_s8, %s1097_s5 }
 0x164   : > { %p731_p11 = scmp.lt.u32.totalorder %s729_s10, %s725_s2  ;;  %p733_p3 = scmp.lt.u32.totalorder %s725_s2, %s1044_s8 }
 0x165   : > { %p727_p10 = pnand %p726_p8, %p923_p12 }
 0x166   : > { %p732_p13 = por %p731_p11, %p730_p4 }
 0x167   : > { %p728_p0 = pneg %p727_p10 }
 0x168   : > { %p734_p7 = por %p733_p3, %p732_p13 }
 0x16a   : > { %p735_p9 = pnand %p734_p7, %p728_p0 }
 0x16c   : > { %738 = shalt.err (!%p735_p9)
}
 0x16d   : > { %s797_s29 = smov 128   ;;  %s798_s7 = smov 8  }
 0x16e   : > { %558 = dma.vmem_to_hbm [thread:$0]  (%p923_p12), %s1046_s23, 256, %s1044_s8, %s392_s22, %s797_s29, %s797_s29, %s798_s7  }
 0x16f PF: > { %s420_s13 = sand.u32 1, %s773_s18   ;;  %p1118_p1 = scmp.ne.s32.totalorder %s1104_s25, 0 }
 0x170   : > { %p1119_p5 = scmp.ge.s32.totalorder %s785_s21, 2  ;;  %s421_s0 = scalar_lea.sflag [#allocation4], %s420_s13 }
 0x172   : > { %p572_p2 = pnand %p1119_p5, %p1118_p1 }
 0x174   : > { %768 = dma.done.wait (!%p572_p2), %s421_s0, 256  }
 0x175   : > { %770 = vsyncadd (!%p572_p2), %s421_s0, 4294967040  ;;  %s1120_s27 = sld [smem:[#allocation13_spill]]  ;;  %p21_p6 = scmp.ge.s32.totalorder %s885_s30, 4  }
 0x176   : > { %s1121_s18 = smov %s777_s19  ;;  %s1122_s19 = smov %s781_s20 }
 0x177   : > { %s1124_s21 = smov %s885_s30  ;;  %23 = sbr.rel (!%p21_p6) target bundleno = 10 (0xa), region = 102 }
 0x17b   : > { %s1123_s20 = smov %s1120_s27 }
 0x17e   :  { %426 = vsyncpa [#allocation3], 1 }
 0x17f   :  { %428 = vsyncpa [#allocation3 + $0x1], 1 }
 0x180   :  { %429 = vsyncpa [#allocation6], 1 }
 0x181   :  { %431 = vsyncpa [#allocation6 + $0x1], 1 }
 0x182   :  { %432 = vsyncpa [#allocation4], 1 }
 0x183   :  { %434 = vsyncpa [#allocation4 + $0x1], 1 }

</bundles_post_ra>
